<compile_context>
chip_gen: v7x
topology: tpu7x:2x2x1
jax: 0.10.0
libtpu: 0.0.40
codegen_flags: <defaults>
</compile_context>

<pallas_src>
import functools

import jax
import jax.numpy as jnp
from jax.experimental import pallas as pl
from jax.experimental.pallas import tpu as pltpu


def _round_up(v, m):
    return (v + m - 1) // m * m


def _chebnet_fused_kernel(x_ref, gso_hbm, w_ref, b_ref, o_ref, gso_vmem, dma_sem,
                          *, poly_order, num_layers, neg_slope):
    """One grid step == one ChebConv layer; activations carried in o_ref."""
    layer = pl.program_id(0)

    @pl.when(layer == 0)
    def _():
        # One-time GSO copy HBM -> single-buffered VMEM scratch (never
        # re-fetched, never double-buffered).
        cp = pltpu.make_async_copy(gso_hbm, gso_vmem, dma_sem)
        cp.start()
        cp.wait()
        # Seed the activation carry with the (padded) input features.
        o_ref[...] = x_ref[...]

    gso = gso_vmem[...]                    # (Np, Np) bf16, single VMEM copy
    x = o_ref[...]                         # (Np, C)  f32 activations of this layer

    # Chebyshev recurrence, statically unrolled (poly_order is small).
    # Each T_k is consumed by its bf16 weight slab right away (f32 accumulate),
    # so only the term being produced is live and the W_k matmul overlaps the
    # next dependent gso @ T matmul.
    t0_bf = x.astype(jnp.bfloat16)
    acc = jnp.dot(t0_bf, w_ref[0], preferred_element_type=jnp.float32)
    if poly_order > 1:
        t_prev = x
        t_cur = jnp.dot(gso, t0_bf, preferred_element_type=jnp.float32)
        t_cur_bf = t_cur.astype(jnp.bfloat16)
        acc = acc + jnp.dot(t_cur_bf, w_ref[1], preferred_element_type=jnp.float32)
        for k in range(2, poly_order):
            t_next = 2.0 * jnp.dot(gso, t_cur_bf,
                                   preferred_element_type=jnp.float32) - t_prev
            t_next_bf = t_next.astype(jnp.bfloat16)
            acc = acc + jnp.dot(t_next_bf, w_ref[k],
                                preferred_element_type=jnp.float32)
            t_prev, t_cur, t_cur_bf = t_cur, t_next, t_next_bf
    acc = acc + b_ref[...]                 # (1, C) f32 bias, broadcast

    @pl.when(layer < num_layers - 1)
    def _():
        # LeakyReLU (slope 0.01) fused; result carried to the next layer.
        # TODO(synk): nn.Dropout is stochastic in train mode; eval-mode identity here.
        o_ref[...] = jnp.where(acc >= 0.0, acc, neg_slope * acc)

    @pl.when(layer == num_layers - 1)
    def _():
        o_ref[...] = acc


def chebnet_forward(x, gso, params):
    """Fused ChebNet forward. params: list of (w[K, C_in, C_out], b[C_out])."""
    n, c_in0 = x.shape
    num_layers = len(params)
    poly_order = params[0][0].shape[0]

    # Lane-dense padding: channels to 128; N also to 128 since it is the
    # contraction (lane) axis of the dominant gso @ T matmuls.  All padding is
    # zeros, so padded channels stay exactly zero through every layer.
    chan_dims = [c_in0] + [w.shape[2] for w, _ in params]
    c_pad = _round_up(max(chan_dims), 128)
    n_pad = _round_up(n, 128)

    x_p = jnp.zeros((n_pad, c_pad), jnp.float32).at[:n, :c_in0].set(
        x.astype(jnp.float32))
    gso_p = jnp.zeros((n_pad, n_pad), jnp.bfloat16).at[:n, :n].set(
        gso.astype(jnp.bfloat16))

    # Per-layer weights padded to a uniform (K, c_pad, c_pad) slab in bf16 and
    # biases to (1, c_pad) in f32 (vectorized pad + stack, no .at[].set loop).
    w_list, b_list = [], []
    for w, b in params:
        _, ci, co = w.shape
        w_list.append(jnp.pad(w, ((0, 0), (0, c_pad - ci), (0, c_pad - co))))
        b_list.append(jnp.pad(b, (0, c_pad - co))[None, :])
    w_all = jnp.stack(w_list).astype(jnp.bfloat16)   # (L, K, c_pad, c_pad)
    b_all = jnp.stack(b_list).astype(jnp.float32)    # (L, 1, c_pad)

    kernel = functools.partial(
        _chebnet_fused_kernel, poly_order=poly_order, num_layers=num_layers,
        neg_slope=0.01)

    # Advisory cost for XLA's scheduler.
    flops = num_layers * ((poly_order - 1) * 2 * n_pad * n_pad * c_pad
                          + poly_order * 2 * n_pad * c_pad * c_pad)
    bytes_accessed = (x_p.size * 4 + gso_p.size * 2 + w_all.size * 2
                      + b_all.size * 4 + n_pad * c_pad * 4)

    # VMEM resident set: single-buffered GSO + o_ref carry + double-buffered
    # x / weights / bias; clamp to [32 MiB, 100 MiB] (defaults are 16/32 MiB).
    vmem_need = (n_pad * n_pad * 2 + n_pad * c_pad * 4
                 + 2 * (n_pad * c_pad * 4)
                 + 2 * (poly_order * c_pad * c_pad * 2 + c_pad * 4))
    vmem_limit = max(32 << 20, min(2 * vmem_need + (4 << 20), 100 << 20))

    out_p = pl.pallas_call(
        kernel,
        out_shape=jax.ShapeDtypeStruct((n_pad, c_pad), jnp.float32),
        grid_spec=pltpu.PrefetchScalarGridSpec(
            num_scalar_prefetch=0,
            grid=(num_layers,),
            in_specs=[
                # input features: constant index map -> DMA'd once, read at layer 0.
                pl.BlockSpec((n_pad, c_pad), lambda l: (0, 0)),
                # GSO: raw HBM ref, copied once into single-buffered VMEM scratch.
                pl.BlockSpec(memory_space=pl.ANY),
                # per-layer bf16 weight slabs / f32 bias: streamed + prefetched.
                pl.BlockSpec((None, poly_order, c_pad, c_pad),
                             lambda l: (l, 0, 0, 0)),
                pl.BlockSpec((None, 1, c_pad), lambda l: (l, 0, 0)),
            ],
            # Constant index map -> o_ref stays VMEM-resident across layers and
            # doubles as the activation carry buffer.
            out_specs=pl.BlockSpec((n_pad, c_pad), lambda l: (0, 0)),
            scratch_shapes=[
                pltpu.VMEM((n_pad, n_pad), jnp.bfloat16),   # GSO (single copy)
                pltpu.SemaphoreType.DMA,
            ],
        ),
        compiler_params=pltpu.CompilerParams(
            # Layer axis is a sequential recurrence (o_ref-carried) -> arbitrary.
            dimension_semantics=("arbitrary",),
            vmem_limit_bytes=int(vmem_limit),
        ),
        cost_estimate=pl.CostEstimate(
            flops=int(flops), transcendentals=0,
            bytes_accessed=int(bytes_accessed)),
    )(x_p, gso_p, w_all, b_all)

    c_out_last = params[-1][0].shape[2]
    # Note: padded node rows (n..n_pad) accumulate bias+LeakyReLU values layer
    # to layer; they never leak into real rows (padded GSO columns are zero)
    # and are sliced off here.  Padded channel columns stay exactly zero.
    return out_p[:n, :c_out_last]


def init_params(key, input_size, hidden_size, output_size,
                poly_order, hidden_layers_number):
    """Deterministic xavier-uniform-like init matching the ChebConvLayer shapes."""
    layer_sizes = [(input_size, hidden_size)]
    layer_sizes += [(hidden_size, hidden_size)] * hidden_layers_number
    layer_sizes += [(hidden_size, output_size)]
    params = []
    for c_in, c_out in layer_sizes:
        key, kw, kb = jax.random.split(key, 3)
        limit = (6.0 / (c_in + c_out)) ** 0.5
        w = jax.random.uniform(kw, (poly_order, c_in, c_out), jnp.float32,
                               minval=-limit, maxval=limit)
        b = jax.random.uniform(kb, (c_out,), jnp.float32, minval=-0.1, maxval=0.1)
        params.append((w, b))
    return params


def _ref_forward(x, gso, params):
    """Pure-JAX f32 reference of ChebNet.forward (eval mode)."""
    h = x
    for idx, (w, b) in enumerate(params):
        terms = [h]
        if w.shape[0] > 1:
            terms.append(gso @ h)
            for _ in range(2, w.shape[0]):
                terms.append(2.0 * (gso @ terms[-1]) - terms[-2])
        y = sum(t @ w[k] for k, t in enumerate(terms)) + b
        if idx < len(params) - 1:
            y = jnp.where(y >= 0.0, y, 0.01 * y)
        h = y
    return h


if __name__ == "__main__":
    key = jax.random.PRNGKey(0)

    # Small shapes consistent with the module: a node-classification style graph.
    N = 16                       # number of graph vertices
    input_size = 8
    hidden_size = 32
    output_size = 8
    poly_order = 3               # Chebyshev K
    hidden_layers_number = 1
    # droprate is irrelevant in eval mode (identity)

    kx, kg, kp = jax.random.split(key, 3)
    x = jax.random.normal(kx, (N, input_size), jnp.float32)

    # Deterministic symmetric normalized graph shift operator (dense).
    a = jax.random.uniform(kg, (N, N), jnp.float32)
    a = (a + a.T) * 0.5
    a = jnp.where(a > 0.5, 1.0, 0.0)
    deg = jnp.maximum(a.sum(axis=1), 1.0)
    d_inv_sqrt = 1.0 / jnp.sqrt(deg)
    gso = d_inv_sqrt[:, None] * a * d_inv_sqrt[None, :]

    params = init_params(kp, input_size, hidden_size, output_size,
                         poly_order, hidden_layers_number)

    out = chebnet_forward(x, gso, params)
    out = jax.block_until_ready(out)
    assert out.shape == (N, output_size), out.shape
    assert bool(jnp.all(jnp.isfinite(out)))

    # Validate the fused bf16 (GSO + weights) kernel against the f32 reference.
    ref = _ref_forward(x, gso, params)
    rel_err = float(jnp.max(jnp.abs(out - ref)) / (jnp.max(jnp.abs(ref)) + 1e-6))
    assert rel_err < 5e-2, rel_err

    print("KERNEL_OK")
</pallas_src>

<mosaic_0001>
module attributes {stable_mosaic.version = 11 : i64} {
  func.func @_chebnet_fused_kernel(%arg0: i32, %arg1: memref<128x128xf32, #tpu.memory_space<vmem>>, %arg2: memref<128x128xbf16, #tpu.memory_space<any>>, %arg3: memref<1x3x128x128xbf16, #tpu.memory_space<vmem>>, %arg4: memref<1x1x128xf32, #tpu.memory_space<vmem>>, %arg5: memref<128x128xf32, #tpu.memory_space<vmem>>, %arg6: memref<128x128xbf16, #tpu.memory_space<vmem>>, %arg7: memref<!tpu.dma_semaphore, #tpu.memory_space<semaphore_mem>>) attributes {dimension_semantics = [#tpu.dimension_semantics<arbitrary>], iteration_bounds = array<i64: 3>, scalar_prefetch = 0 : i64, scratch_operands = 2 : i64, tpu.core_type = #tpu.core_type<tc>, window_params = [{pipeline_mode = #tpu.pipeline_mode<synchronous>, transform_indices = @transform_0, window_bounds = array<i64: 128, 128>}, {}, {transform_indices = @transform_2, window_bounds = array<i64: 1, 3, 128, 128>}, {transform_indices = @transform_3, window_bounds = array<i64: 1, 1, 128>}, {pipeline_mode = #tpu.pipeline_mode<synchronous>, transform_indices = @transform_4, window_bounds = array<i64: 128, 128>}]} {
    %c0_i32 = arith.constant 0 : i32
    %0 = arith.cmpi eq, %arg0, %c0_i32 : i32
    %1 = arith.extui %0 : i1 to i32
    %c0_i32_0 = arith.constant 0 : i32
    %2 = arith.cmpi ne, %1, %c0_i32_0 : i32
    scf.if %2 {
      tpu.enqueue_dma source(%arg2 : memref<128x128xbf16, #tpu.memory_space<any>>) target(%arg6 : memref<128x128xbf16, #tpu.memory_space<vmem>>) target_semaphore(%arg7 : memref<!tpu.dma_semaphore, #tpu.memory_space<semaphore_mem>>)
      tpu.wait_dma2 semaphore(%arg7 : memref<!tpu.dma_semaphore, #tpu.memory_space<semaphore_mem>>) src(%arg2 : memref<128x128xbf16, #tpu.memory_space<any>>) dst(%arg6 : memref<128x128xbf16, #tpu.memory_space<vmem>>)
      %c0_25 = arith.constant 0 : index
      %c0_26 = arith.constant 0 : index
      %34 = vector.load %arg1[%c0_25, %c0_26] : memref<128x128xf32, #tpu.memory_space<vmem>>, vector<128x128xf32>
      %c0_27 = arith.constant 0 : index
      %c0_28 = arith.constant 0 : index
      %35 = vector.load %arg5[%c0_27, %c0_28] : memref<128x128xf32, #tpu.memory_space<vmem>>, vector<128x128xf32>
      tpu.vector_store %arg5[%c0_27, %c0_28], %34 {strides = array<i32>} : memref<128x128xf32, #tpu.memory_space<vmem>>, vector<128x128xf32>,
    } else {
    }
    %c0 = arith.constant 0 : index
    %c0_1 = arith.constant 0 : index
    %3 = vector.load %arg6[%c0, %c0_1] : memref<128x128xbf16, #tpu.memory_space<vmem>>, vector<128x128xbf16>
    %c0_2 = arith.constant 0 : index
    %c0_3 = arith.constant 0 : index
    %4 = vector.load %arg5[%c0_2, %c0_3] : memref<128x128xf32, #tpu.memory_space<vmem>>, vector<128x128xf32>
    %5 = arith.truncf %4 : vector<128x128xf32> to vector<128x128xbf16>
    %c0_4 = arith.constant 0 : index
    %c0_5 = arith.constant 0 : index
    %c0_6 = arith.constant 0 : index
    %c0_7 = arith.constant 0 : index
    %6 = vector.load %arg3[%c0_4, %c0_5, %c0_6, %c0_7] : memref<1x3x128x128xbf16, #tpu.memory_space<vmem>>, vector<1x1x128x128xbf16>
    %7 = vector.shape_cast %6 : vector<1x1x128x128xbf16> to vector<128x128xbf16>
    %cst = arith.constant dense<0.000000e+00> : vector<128x128xf32>
    %8 = tpu.matmul %5, %7, %cst {dimension_numbers = #tpu.dot_dimension_numbers<[1], [0], [0], [1], [0, 0, 1, 1], [], []>} : vector<128x128xbf16>, vector<128x128xbf16>, vector<128x128xf32> -> vector<128x128xf32>
    %cst_8 = arith.constant dense<0.000000e+00> : vector<128x128xf32>
    %9 = tpu.matmul %3, %5, %cst_8 {dimension_numbers = #tpu.dot_dimension_numbers<[1], [0], [0], [1], [0, 0, 1, 1], [], []>} : vector<128x128xbf16>, vector<128x128xbf16>, vector<128x128xf32> -> vector<128x128xf32>
    %10 = arith.truncf %9 : vector<128x128xf32> to vector<128x128xbf16>
    %c0_9 = arith.constant 0 : index
    %c1 = arith.constant 1 : index
    %c0_10 = arith.constant 0 : index
    %c0_11 = arith.constant 0 : index
    %11 = vector.load %arg3[%c0_9, %c1, %c0_10, %c0_11] : memref<1x3x128x128xbf16, #tpu.memory_space<vmem>>, vector<1x1x128x128xbf16>
    %12 = vector.shape_cast %11 : vector<1x1x128x128xbf16> to vector<128x128xbf16>
    %cst_12 = arith.constant dense<0.000000e+00> : vector<128x128xf32>
    %13 = tpu.matmul %10, %12, %cst_12 {dimension_numbers = #tpu.dot_dimension_numbers<[1], [0], [0], [1], [0, 0, 1, 1], [], []>} : vector<128x128xbf16>, vector<128x128xbf16>, vector<128x128xf32> -> vector<128x128xf32>
    %14 = arith.addf %8, %13 : vector<128x128xf32>
    %cst_13 = arith.constant dense<0.000000e+00> : vector<128x128xf32>
    %15 = tpu.matmul %3, %10, %cst_13 {dimension_numbers = #tpu.dot_dimension_numbers<[1], [0], [0], [1], [0, 0, 1, 1], [], []>} : vector<128x128xbf16>, vector<128x128xbf16>, vector<128x128xf32> -> vector<128x128xf32>
    %cst_14 = arith.constant 2.000000e+00 : f32
    %16 = vector.broadcast %cst_14 : f32 to vector<128x128xf32>
    %17 = arith.mulf %16, %15 : vector<128x128xf32>
    %18 = arith.subf %17, %4 : vector<128x128xf32>
    %19 = arith.truncf %18 : vector<128x128xf32> to vector<128x128xbf16>
    %c0_15 = arith.constant 0 : index
    %c2 = arith.constant 2 : index
    %c0_16 = arith.constant 0 : index
    %c0_17 = arith.constant 0 : index
    %20 = vector.load %arg3[%c0_15, %c2, %c0_16, %c0_17] : memref<1x3x128x128xbf16, #tpu.memory_space<vmem>>, vector<1x1x128x128xbf16>
    %21 = vector.shape_cast %20 : vector<1x1x128x128xbf16> to vector<128x128xbf16>
    %cst_18 = arith.constant dense<0.000000e+00> : vector<128x128xf32>
    %22 = tpu.matmul %19, %21, %cst_18 {dimension_numbers = #tpu.dot_dimension_numbers<[1], [0], [0], [1], [0, 0, 1, 1], [], []>} : vector<128x128xbf16>, vector<128x128xbf16>, vector<128x128xf32> -> vector<128x128xf32>
    %23 = arith.addf %14, %22 : vector<128x128xf32>
    %c0_19 = arith.constant 0 : index
    %c0_20 = arith.constant 0 : index
    %c0_21 = arith.constant 0 : index
    %24 = vector.load %arg4[%c0_19, %c0_20, %c0_21] : memref<1x1x128xf32, #tpu.memory_space<vmem>>, vector<1x1x128xf32>
    %25 = vector.shape_cast %24 : vector<1x1x128xf32> to vector<1x128xf32>
    %26 = vector.broadcast %25 : vector<1x128xf32> to vector<128x128xf32>
    %27 = arith.addf %23, %26 : vector<128x128xf32>
    %c2_i32 = arith.constant 2 : i32
    %28 = arith.cmpi slt, %arg0, %c2_i32 : i32
    %29 = arith.extui %28 : i1 to i32
    %c0_i32_22 = arith.constant 0 : i32
    %30 = arith.cmpi ne, %29, %c0_i32_22 : i32
    scf.if %30 {
      %cst_25 = arith.constant 0.000000e+00 : f32
      %34 = vector.broadcast %cst_25 : f32 to vector<128x128xf32>
      %35 = arith.cmpf oge, %27, %34 : vector<128x128xf32>
      %cst_26 = arith.constant 0.00999999977 : f32
      %36 = vector.broadcast %cst_26 : f32 to vector<128x128xf32>
      %37 = arith.mulf %36, %27 : vector<128x128xf32>
      %38 = arith.select %35, %27, %37 : vector<128x128xi1>, vector<128x128xf32>
      %c0_27 = arith.constant 0 : index
      %c0_28 = arith.constant 0 : index
      %39 = vector.load %arg5[%c0_27, %c0_28] : memref<128x128xf32, #tpu.memory_space<vmem>>, vector<128x128xf32>
      tpu.vector_store %arg5[%c0_27, %c0_28], %38 {strides = array<i32>} : memref<128x128xf32, #tpu.memory_space<vmem>>, vector<128x128xf32>,
    } else {
    }
    %c2_i32_23 = arith.constant 2 : i32
    %31 = arith.cmpi eq, %arg0, %c2_i32_23 : i32
    %32 = arith.extui %31 : i1 to i32
    %c0_i32_24 = arith.constant 0 : i32
    %33 = arith.cmpi ne, %32, %c0_i32_24 : i32
    scf.if %33 {
      %c0_25 = arith.constant 0 : index
      %c0_26 = arith.constant 0 : index
      %34 = vector.load %arg5[%c0_25, %c0_26] : memref<128x128xf32, #tpu.memory_space<vmem>>, vector<128x128xf32>
      tpu.vector_store %arg5[%c0_25, %c0_26], %27 {strides = array<i32>} : memref<128x128xf32, #tpu.memory_space<vmem>>, vector<128x128xf32>,
    } else {
    }
    return
  }
  func.func @transform_0(%arg0: i32) -> (i32, i32) {
    %c0_i32 = arith.constant 0 : i32
    %c0_i32_0 = arith.constant 0 : i32
    %c0_i32_1 = arith.constant 0 : i32
    return %c0_i32, %c0_i32_0 : i32, i32
  }
  func.func @transform_2(%arg0: i32) -> (i32, i32, i32, i32) {
    %c0_i32 = arith.constant 0 : i32
    %c0_i32_0 = arith.constant 0 : i32
    %c0_i32_1 = arith.constant 0 : i32
    %c0_i32_2 = arith.constant 0 : i32
    return %arg0, %c0_i32, %c0_i32_0, %c0_i32_1 : i32, i32, i32, i32
  }
  func.func @transform_3(%arg0: i32) -> (i32, i32, i32) {
    %c0_i32 = arith.constant 0 : i32
    %c0_i32_0 = arith.constant 0 : i32
    %c0_i32_1 = arith.constant 0 : i32
    return %arg0, %c0_i32, %c0_i32_0 : i32, i32, i32
  }
  func.func @transform_4(%arg0: i32) -> (i32, i32) {
    %c0_i32 = arith.constant 0 : i32
    %c0_i32_0 = arith.constant 0 : i32
    %c0_i32_1 = arith.constant 0 : i32
    return %c0_i32, %c0_i32_0 : i32, i32
  }
}

</mosaic_0001>

<bundles_post_ra>
// kernel: tpu_custom_call.1
= control target key start
LH: loop header
LB: loop body
LE: loop exit
PB: predicated region body
PF: predicated region fallthrough
CT: control target
= control target key end

     0   :  { %9 = vsyncpa [#allocation5], 0  ;;  %s2341_s0 = inlined_call_operand.hbm [shape: f32[128,128], index: 0, kind: input, shape index: {}]   ;;  %s2342_s1 = inlined_call_operand.hbm [shape: bf16[128,128], index: 1, kind: input, shape index: {}]   ;;  %s2343_s2 = inlined_call_operand.hbm [shape: bf16[3,3,128,128], index: 2, kind: input, shape index: {}]   ;;  %s2344_s3 = inlined_call_operand.vmem [shape: f32[3,1,128], index: 3, kind: input, shape index: {}]   ;;  %s2345_s4 = inlined_call_operand.hbm [shape: f32[128,128], index: 4, kind: output, shape index: {}]  }
   0x1   :  { %10 = vsyncpa [#allocation8], 0 }
   0x2   :  { %12 = vsyncpa [#allocation8 + $0x1], 0 }
   0x3   :  { %13 = vsyncpa [#allocation6], 0  ;;  %s1869_s15 = smov 0   ;;  %s1871_s16 = smov 0  }
   0x4   :  { %s1873_s17 = smov 0   ;;  %s1875_s18 = smov 0  }
   0x5 LB: > { %s1888_s19 = sadd.s32 4294967295, %s1832_s18   ;;  %p60_p0 = scmp.ne.s32.totalorder %s1824_s16, %s1820_s15  ;;  %s1832_s18 = sphi %s1875_s18, %s2361_s18   ;;  %s1828_s17 = sphi %s1873_s17, %s2360_s17   ;;  %s1824_s16 = sphi %s1871_s16, %s2359_s16   ;;  %s1820_s15 = sphi %s1869_s15, %s2358_s15  }
   0x6   : > { %p2346_p1 = scmp.eq.s32.totalorder %s1888_s19, 0  ;;  %p1232_p2 = scmp.ge.s32.totalorder %s1832_s18, 1 }
   0x7   : > { %p118_p3 = scmp.lt.s32.totalorder %s1832_s18, 4  ;;  %s1834_s22 = smov [#allocation4]  }
   0x8   : > { %p1897_p5 = por %p2346_p1, %p60_p0  ;;  %s130_s23 = sshll.u32 %s1834_s22, 4  ;;  %s131_s23 = int_to_ptr.vmem [resolvable:$true] %s130_s23 }
   0x9   : > { %p1901_p6 = pnand %p1232_p2, %p118_p3  ;;  %s1914_s25 = sadd.s32 1, %s1832_s18  }
   0xa   : > { %s2349_s20 = scalar_select %p1897_p5, 1, 0 }
   0xb   : > { %s2350_s21 = scalar_select %p1901_p6, 1, 0 }
   0xc   : > { %p1604_p7 = pneg %p1901_p6  ;;  %s47_s26 = sadd.s32 1, %s1828_s17 }
   0xd   : > { %s44_s27 = ssub.s32 %s1832_s18, %s1914_s25  ;;  %s1682_s30 = scalar_lea.hbm %s2341_s0, 2048 }
   0xe   : > { %p1909_p8 = pnand %p1604_p7, %p2346_p1  ;;  %p1683_p9 = scmp.ne.s32.totalorder %s2341_s0, %s1682_s30 }
   0xf   : > { %p1689_p13 = scmp.lt.u32.totalorder %s1682_s30, %s2341_s0 }
  0x10   : > { %p1684_p10 = pneg %p1909_p8 }
  0x12   : > { %p1685_p11 = pnand %p1684_p10, %p1683_p9 }
  0x14   : > { %p1686_p12 = pneg %p1685_p11 }
  0x16   : > { %p1691_p0 = pnand %p1689_p13, %p1686_p12 }
  0x18   : > { %1694 = shalt.err (!%p1691_p0)
}
  0x19   : > { %s1695_s9 = scalar_lea.vmem %s131_s23, 2048  ;;  %p1703_p4 = scmp.lt.s32.totalorder %s131_s23, %s131_s23 }
  0x1a   : > { %p1696_p2 = scmp.ne.s32.totalorder %s131_s23, %s1695_s9  ;;  %p1704_p1 = scmp.lt.s32.totalorder %s1695_s9, %s1695_s9 }
  0x1c   : > { %p1698_p3 = pnand %p1696_p2, %p1684_p10  ;;  %p1705_p5 = por %p1704_p1, %p1703_p4 }
  0x1e   : > { %p1699_p7 = pneg %p1698_p3 }
  0x20   : > { %p1706_p6 = pnand %p1705_p5, %p1699_p7 }
  0x22   : > { %1709 = shalt.err (!%p1706_p6)
}
  0x23   : > { %s1835_s10 = smov 128   ;;  %s1836_s11 = smov 8  }
  0x24   : > { %1607 = dma.hbm_to_vmem [thread:$0]  (!%p1909_p8), %s2341_s0, 2048, %s131_s23, [#allocation5], %s1835_s10, %s1835_s10, %s1836_s11  }
  0x25   : > { %p45_p9 = scmp.eq.s32.totalorder %s44_s27, 0  ;;  %p54_p10 = scmp.ne.s32.totalorder %s1828_s17, %s1824_s16 }
  0x26   : > { %p55_p1 = scmp.eq.s32.totalorder %s1832_s18, 0  ;;  %p1613_p4 = scmp.lt.s32.totalorder %s1832_s18, 3 }
  0x27   : > { %s1940_s14 = scalar_select %p45_p9, %s1828_s17, %s47_s26  }
  0x28   : > { %p56_p5 = por %p55_p1, %p54_p10  ;;  %s144_s15 = sand.u32 1, %s1828_s17  }
  0x29   : > { %s1591_s22 = smul.u32 192, %s144_s15  ;;  %s1715_s8 = scalar_lea.hbm %s2343_s2, 9216 }
  0x2a   : > { %s1592_s28 = smul.u32 3072, %s1832_s18  ;;  %p1944_p6 = pnand %p1613_p4, %p56_p5 }
  0x2b   : > { %s148_s26 = scalar_lea.vmem [#allocation7], %s1591_s22  ;;  %s1955_s18 = scalar_lea.sflag [#allocation8], %s144_s15 }
  0x2c   : > { %s1951_s23 = scalar_lea.hbm %s2343_s2, %s1592_s28  ;;  %s155_s27 = sshll.u32 %s148_s26, 4  ;;  %s1953_s27 = int_to_ptr.vmem [resolvable:$true] %s155_s27 }
  0x2d   : > { %s1710_s5 = scalar_lea.hbm %s1951_s23, 3072  ;;  %p1712_p11 = pneg %p1944_p6 }
  0x2e   : > { %p1711_p8 = scmp.ne.s32.totalorder %s1951_s23, %s1710_s5  ;;  %p1716_p0 = scmp.lt.u32.totalorder %s1951_s23, %s2343_s2 }
  0x2f   : > { %p1717_p2 = scmp.lt.u32.totalorder %s1715_s8, %s1710_s5  ;;  %p1719_p7 = scmp.lt.u32.totalorder %s1710_s5, %s1951_s23 }
  0x30   : > { %p1713_p12 = pnand %p1712_p11, %p1711_p8 }
  0x31   : > { %p1718_p3 = por %p1717_p2, %p1716_p0 }
  0x32   : > { %p1714_p13 = pneg %p1713_p12 }
  0x33   : > { %p1720_p9 = por %p1719_p7, %p1718_p3 }
  0x35   : > { %p1721_p10 = pnand %p1720_p9, %p1714_p13 }
  0x37   : > { %1724 = shalt.err (!%p1721_p10)
}
  0x38   : > { %s1725_s11 = scalar_lea.vmem %s1953_s27, 3072  ;;  %s1837_s12 = smov [#allocation7]  }
  0x39   : > { %p1726_p1 = scmp.ne.s32.totalorder %s1953_s27, %s1725_s11  ;;  %s1730_s13 = sshll.u32 %s1837_s12, 4  ;;  %s1731_s13 = int_to_ptr.vmem [resolvable:$false] %s1730_s13 }
  0x3a   : > { %s1732_s15 = scalar_lea.vmem %s1731_s13, 6144  ;;  %p1733_p8 = scmp.lt.s32.totalorder %s1953_s27, %s1731_s13 }
  0x3b   : > { %p1728_p4 = pnand %p1726_p1, %p1712_p11  ;;  %p1734_p12 = scmp.lt.s32.totalorder %s1732_s15, %s1725_s11 }
  0x3d   : > { %p1729_p5 = pneg %p1728_p4  ;;  %p1735_p0 = por %p1734_p12, %p1733_p8 }
  0x3f   : > { %p1736_p2 = pnand %p1735_p0, %p1729_p5 }
  0x41   : > { %1739 = shalt.err (!%p1736_p2)
}
  0x42   : > { %s1838_s22 = smov 64   ;;  %s1839_s28 = smov 4  }
  0x43   : > { %1611 = dma.hbm_to_vmem [thread:$0]  (!%p1944_p6), %s1951_s23, 3072, %s1953_s27, %s1955_s18, %s1838_s22, %s1838_s22, %s1839_s28  }
  0x44   : > { %p2353_p11 = scmp.ne.s32.totalorder %s2350_s21, 0 }
  0x45   : > { %p2354_p13 = scmp.eq.s32.totalorder (!%p2353_p11), %s1888_s19, 0 }
  0x46   : > { %173 = sbr.rel (%p2353_p11) target bundleno = 899 (0x383), region = 32 }
  0x4d   : > { %1805 = dma.done.wait (%p2354_p13), [#allocation5], 2048   ;;  %p2355_p3 = pmov %p2354_p13 }
  0x4e   : > { %s179_s30 = sand.u32 1, %s1824_s16   ;;  %p2356_p7 = scmp.ne.s32.totalorder %s2349_s20, 0 }
  0x4f   : > { %1807 = vsyncadd (%p2355_p3), [#allocation5], 4294965248  ;;  %s1593_s24 = smul.u32 192, %s179_s30  ;;  %s180_s26 = scalar_lea.sflag [#allocation8], %s179_s30 }
  0x51   : > { %s1990_s5 = scalar_lea.vmem [#allocation7], %s1593_s24 }
  0x52   : > { %1809 = dma.done.wait (%p2356_p7), %s180_s26, 3072  }
  0x53   : > { %1811 = vsyncadd (%p2356_p7), %s180_s26, 4294964224  ;;  %p204_p6 = scmp.lt.s32.totalorder %s1888_s19, 2  ;;  %p2357_p9 = scmp.ne.s32.totalorder %s1888_s19, 0 }
  0x54   : > { %s1840_s18 = smov (!%p2357_p9), [#allocation2]   ;;  %s1740_s20 = scalar_lea.hbm (!%p2357_p9), %s2342_s1, 1024 }
  0x55   : > { %s1998_s21 = scalar_select %p204_p6, %s1888_s19, 2 }
  0x56   : > { %211 = sbr.rel (%p2357_p9) target bundleno = 113 (0x71), region = 44  ;;  %s219_s6 = sshll.u32 (!%p2357_p9), %s1840_s18, 4  ;;  %s220_s6 = int_to_ptr.vmem [resolvable:$true] %s219_s6 }
  0x57   : > { %s206_s27 = scalar_lea.vmem %s2344_s3, %s1998_s21  ;;  %p1741_p10 = scmp.ne.s32.totalorder (!%p2357_p9), %s2342_s1, %s1740_s20 }
  0x58   : > { %p1744_p1 = scmp.lt.u32.totalorder (!%p2357_p9), %s1740_s20, %s2342_s1 }
  0x5a   : > { %p1746_p4 = pnand (!%p2357_p9), %p1744_p1, %p1741_p10 }
  0x5d   : > { %1749 = shalt.err (!%p1746_p4)  }
  0x5e   : > { %s1750_s13 = scalar_lea.vmem %s220_s6, 1024  ;;  %p1755_p8 = scmp.lt.s32.totalorder %s220_s6, %s220_s6 }
  0x5f   : > { %p1751_p5 = scmp.ne.s32.totalorder %s220_s6, %s1750_s13  ;;  %p1756_p12 = scmp.lt.s32.totalorder %s1750_s13, %s1750_s13 }
  0x61   : > { %p1757_p0 = por %p1756_p12, %p1755_p8 }
  0x63   : > { %p1758_p2 = pnand %p1757_p0, %p1751_p5 }
  0x65   : > { %1761 = shalt.err (!%p1758_p2)  }
  0x66   : > { %222 = dma.hbm_to_vmem [thread:$0]  %s2342_s1, 1024, %s220_s6, [#allocation3] }
  0x67   : > { %1812 = dma.done.wait [#allocation3], 1024 }
  0x68   : > { %1813 = vsyncadd [#allocation3], 4294966272  ;;  %v227_v0 = vld [vmem:[#allocation4] sm:$0xff]  ;;  %v228_v1 = vld [vmem:[#allocation4 + $0x8] sm:$0xff] }
  0x69   : > { %v229_v2 = vld [vmem:[#allocation4 + $0x10] sm:$0xff]  ;;  %243 = vst [vmem:[#allocation9] sm:$0xff] %v227_v0  ;;  %244 = vst [vmem:[#allocation9 + $0x8] sm:$0xff] %v228_v1  ;;  %v230_v3 = vld [vmem:[#allocation4 + $0x18] sm:$0xff] }
  0x6a   : > { %245 = vst [vmem:[#allocation9 + $0x10] sm:$0xff] %v229_v2  ;;  %v231_v4 = vld [vmem:[#allocation4 + $0x20] sm:$0xff]  ;;  %v232_v5 = vld [vmem:[#allocation4 + $0x28] sm:$0xff]  ;;  %246 = vst [vmem:[#allocation9 + $0x18] sm:$0xff] %v230_v3 }
  0x6b   : > { %247 = vst [vmem:[#allocation9 + $0x20] sm:$0xff] %v231_v4  ;;  %248 = vst [vmem:[#allocation9 + $0x28] sm:$0xff] %v232_v5  ;;  %v233_v6 = vld [vmem:[#allocation4 + $0x30] sm:$0xff]  ;;  %v234_v7 = vld [vmem:[#allocation4 + $0x38] sm:$0xff] }
  0x6c   : > { %v235_v8 = vld [vmem:[#allocation4 + $0x40] sm:$0xff]  ;;  %249 = vst [vmem:[#allocation9 + $0x30] sm:$0xff] %v233_v6  ;;  %250 = vst [vmem:[#allocation9 + $0x38] sm:$0xff] %v234_v7  ;;  %v236_v9 = vld [vmem:[#allocation4 + $0x48] sm:$0xff] }
  0x6d   : > { %251 = vst [vmem:[#allocation9 + $0x40] sm:$0xff] %v235_v8  ;;  %v237_v10 = vld [vmem:[#allocation4 + $0x50] sm:$0xff]  ;;  %v238_v11 = vld [vmem:[#allocation4 + $0x58] sm:$0xff]  ;;  %252 = vst [vmem:[#allocation9 + $0x48] sm:$0xff] %v236_v9 }
  0x6e   : > { %253 = vst [vmem:[#allocation9 + $0x50] sm:$0xff] %v237_v10  ;;  %254 = vst [vmem:[#allocation9 + $0x58] sm:$0xff] %v238_v11  ;;  %v239_v12 = vld [vmem:[#allocation4 + $0x60] sm:$0xff]  ;;  %v240_v13 = vld [vmem:[#allocation4 + $0x68] sm:$0xff] }
  0x6f   : > { %v241_v14 = vld [vmem:[#allocation4 + $0x70] sm:$0xff]  ;;  %255 = vst [vmem:[#allocation9 + $0x60] sm:$0xff] %v239_v12  ;;  %256 = vst [vmem:[#allocation9 + $0x68] sm:$0xff] %v240_v13  ;;  %v242_v15 = vld [vmem:[#allocation4 + $0x78] sm:$0xff] }
  0x70   : > { %257 = vst [vmem:[#allocation9 + $0x70] sm:$0xff] %v241_v14  ;;  %258 = vst [vmem:[#allocation9 + $0x78] sm:$0xff] %v242_v15 }
  0x71 PF: > { %v2018_v16 = vld [vmem:[#allocation9] sm:$0xff]  ;;  %v2020_v17 = vld [vmem:[#allocation9 + $0x8] sm:$0xff]  ;;  %v2022_v18 = vld [vmem:[#allocation9 + $0x10] sm:$0xff]  ;;  %p1296_p11 = scmp.ge.s32.totalorder %s1888_s19, 2 }
  0x72   : > { %v2026_v19 = vpack.c.bf16 %v2020_v17, %v2018_v16  ;;  %v2028_v20 = vld [vmem:[#allocation9 + $0x18] sm:$0xff]  ;;  %v2034_v22 = vld [vmem:[#allocation9 + $0x20] sm:$0xff]  ;;  %v2036_v23 = vld [vmem:[#allocation9 + $0x28] sm:$0xff] }
  0x73   : > { %v2032_v21 = vpack.c.bf16 %v2028_v20, %v2022_v18  ;;  %v2043_v24 = vpack.c.bf16 %v2036_v23, %v2034_v22  ;;  %v2045_v25 = vld [vmem:[#allocation2] sm:$0xff]  ;;  %v2047_v26 = vld [vmem:[#allocation9 + $0x30] sm:$0xff]  ;;  %v2049_v27 = vld [vmem:[#allocation9 + $0x38] sm:$0xff] }
  0x74   : > { %1383 = vmatprep.subr.bf16.mxu0 %v2026_v19  ;;  %1399 = vmatprep.mubr.bf16.mxu0 %v2045_v25  ;;  %v2053_v28 = vld [vmem:[#allocation9 + $0x40] sm:$0xff]  ;;  %v2059_v30 = vpack.c.bf16 %v2049_v27, %v2047_v26  ;;  %v1659_v31 = vld [vmem:[%s1990_s5 + $0x48] sm:$0xff]   ;;  %v1660_v34 = vld [vmem:[%s1990_s5 + $0x50] sm:$0xff]  }
  0x75   : > { %1384 = vmatpush3.bf16.msra.mxu0 %v2026_v19  ;;  %v1658_v29 = vld [vmem:[%s1990_s5 + $0x40] sm:$0xff]   ;;  %v2062_v32 = vld [vmem:[#allocation9 + $0x48] sm:$0xff]  ;;  %v2065_v33 = vld [vmem:[#allocation9 + $0x50] sm:$0xff] }
  0x76   : > { %1385 = vmatprep.subr.bf16.mxu0 %v2032_v21  ;;  %1415 = vmatprep.subr.bf16.mxu1 %v1658_v29  ;;  %v2071_v35 = vpack.c.bf16 %v2062_v32, %v2053_v28  ;;  %v2073_v36 = vld [vmem:[#allocation9 + $0x58] sm:$0xff]  ;;  %v2077_v38 = vld [vmem:[#allocation9 + $0x60] sm:$0xff]  ;;  %v2079_v39 = vld [vmem:[#allocation9 + $0x68] sm:$0xff] }
  0x77   : > { %1416 = vmatpush3.bf16.msra.mxu1 %v1658_v29  ;;  %v1661_v37 = vld [vmem:[%s1990_s5 + $0x58] sm:$0xff]   ;;  %v2084_v40 = vpack.c.bf16 %v2073_v36, %v2065_v33  ;;  %v1662_v41 = vld [vmem:[%s1990_s5 + $0x60] sm:$0xff]   ;;  %v2088_v42 = vld [vmem:[#allocation9 + $0x70] sm:$0xff]  ;;  %v2095_v44 = vpack.c.bf16 %v2079_v39, %v2077_v38 }
  0x78   : > { %1417 = vmatprep.subr.bf16.mxu1 %v1659_v31  ;;  %v2090_v43 = vld [vmem:[#allocation9 + $0x78] sm:$0xff]  ;;  %v1663_v45 = vld [vmem:[%s1990_s5 + $0x68] sm:$0xff]   ;;  %v1664_v47 = vld [vmem:[%s1990_s5 + $0x70] sm:$0xff]  }
  0x79   : > { %1386 = vmatpush3.bf16.msra.mxu0 %v2032_v21  ;;  %v2102_v46 = vpack.c.bf16 %v2090_v43, %v2088_v42  ;;  %v2108_v48 = vld [vmem:[#allocation2 + $0x8] sm:$0xff]  ;;  %v2110_v49 = vld [vmem:[#allocation2 + $0x10] sm:$0xff]  ;;  %v2114_v50 = vld [vmem:[#allocation2 + $0x18] sm:$0xff] }
  0x7a   : > { %1387 = vmatprep.subr.bf16.mxu0 %v2043_v24  ;;  %v2116_v51 = vld [vmem:[#allocation2 + $0x20] sm:$0xff]  ;;  %v2120_v52 = vld [vmem:[#allocation2 + $0x28] sm:$0xff]  ;;  %v2122_v53 = vld [vmem:[#allocation2 + $0x30] sm:$0xff] }
  0x7b   : > { %1418 = vmatpush3.bf16.msra.mxu1 %v1659_v31  ;;  %v2126_v54 = vld [vmem:[#allocation2 + $0x38] sm:$0xff]  ;;  %v1666_v56 = vld [vmem:[%s1990_s5] sm:$0xff]   ;;  %v1667_v63 = vld [vmem:[%s1990_s5 + $0x8] sm:$0xff]  }
  0x7c   : > { %1419 = vmatprep.subr.bf16.mxu1 %v1660_v34  ;;  %v1665_v55 = vld [vmem:[%s1990_s5 + $0x78] sm:$0xff]   ;;  %v1668_v2 = vld [vmem:[%s1990_s5 + $0x10] sm:$0xff]   ;;  %v1670_v10 = vld [vmem:[%s1990_s5 + $0x20] sm:$0xff]  }
  0x7d   : > { %1388 = vmatpush3.bf16.msra.mxu0 %v2043_v24  ;;  %v1669_v7 = vld [vmem:[%s1990_s5 + $0x18] sm:$0xff]   ;;  %v1671_v15 = vld [vmem:[%s1990_s5 + $0x28] sm:$0xff]   ;;  %v1672_v31 = vld [vmem:[%s1990_s5 + $0x30] sm:$0xff]  }
  0x7e   : > { %1389 = vmatprep.subr.bf16.mxu0 %v2059_v30 }
  0x7f   : > { %1420 = vmatpush3.bf16.msra.mxu1 %v1660_v34 }
  0x80   : > { %1421 = vmatprep.subr.bf16.mxu1 %v1661_v37 }
  0x81   : > { %1390 = vmatpush3.bf16.msra.mxu0 %v2059_v30 }
  0x82   : > { %1391 = vmatprep.subr.bf16.mxu0 %v2071_v35 }
  0x83   : > { %1422 = vmatpush3.bf16.msra.mxu1 %v1661_v37 }
  0x84   : > { %1423 = vmatprep.subr.bf16.mxu1 %v1662_v41 }
  0x85   : > { %1392 = vmatpush3.bf16.msra.mxu0 %v2071_v35 }
  0x86   : > { %1393 = vmatprep.subr.bf16.mxu0 %v2084_v40 }
  0x87   : > { %1424 = vmatpush3.bf16.msra.mxu1 %v1662_v41 }
  0x88   : > { %1425 = vmatprep.subr.bf16.mxu1 %v1663_v45 }
  0x89   : > { %1394 = vmatpush3.bf16.msra.mxu0 %v2084_v40 }
  0x8a   : > { %1395 = vmatprep.subr.bf16.mxu0 %v2095_v44 }
  0x8b   : > { %1426 = vmatpush3.bf16.msra.mxu1 %v1663_v45 }
  0x8c   : > { %1427 = vmatprep.subr.bf16.mxu1 %v1664_v47 }
  0x8d   : > { %1396 = vmatpush3.bf16.msra.mxu0 %v2095_v44 }
  0x8e   : > { %1397 = vmatprep.subr.bf16.mxu0 %v2102_v46 }
  0x8f   : > { %1428 = vmatpush3.bf16.msra.mxu1 %v1664_v47  ;;  %v1673_v47 = vld [vmem:[%s1990_s5 + $0x38] sm:$0xff]  }
  0x90   : > { %1429 = vmatprep.subr.bf16.mxu1 %v1665_v55 }
  0x91   : > { %1398 = vmatpush3.bf16.msra.mxu0 %v2102_v46 }
  0x93   : > { %1430 = vmatpush3.bf16.msra.mxu1 %v1665_v55  ;;  %v1674_v55 = vld [vmem:[%s1990_s5 + $0x80] sm:$0xff]  }
  0x94   : > { %1400 = vmatmul.mubr.bf16.vlgmr.msra.gmra.mrb[0].mxu0 %v2108_v48  ;;  %1447 = vmatprep.subr.bf16.mxu1 %v1666_v56 }
  0x95   : > { %1403 = vmatprep.mubr.bf16.mxu0 %v2110_v49 }
  0x9c   : > { %1404 = vmatmul.mubr.bf16.gmra.mrb[4].mxu0 %v2114_v50 }
  0x9d   : > { %1407 = vmatprep.mubr.bf16.mxu0 %v2116_v51 }
  0xa4   : > { %1408 = vmatmul.mubr.bf16.gmra.mrb[8].mxu0 %v2120_v52 }
  0xa5   : > { %1411 = vmatprep.mubr.bf16.mxu0 %v2122_v53 }
  0xac   : > { %1412 = vmatmul.mubr.bf16.gmra.mrb[12].mxu0 %v2126_v54 }
  0xad   : > { %1495 = vmatprep.mubr.bf16.mxu0 %v2045_v25 }
 0x167   : > { %v1401_v57 = vpop.f32.mrb[0].mxu0 }
 0x168   : > { %v341_v58 = vpop.f32.mrb[1].mxu0 }
 0x169   : > { %v1402_v59 = vpop.f32.mrb[2].mxu0 }
 0x16a   : > { %v405_v60 = vpack.c.bf16 %v1402_v59, %v1401_v57  ;;  %v344_v61 = vpop.f32.mrb[3].mxu0  ;;  %v1676_v57 = vld [vmem:[%s1990_s5 + $0x90] sm:$0xff]  }
 0x16b   : > { %v404_v62 = vpack.c.bf16 %v344_v61, %v341_v58 }
 0x16d   : > { %1431 = vmatprep.mubr.bf16.mxu1 %v404_v62  ;;  %1479 = vmatprep.subr.bf16.mxu0 %v404_v62 }
 0x16e   : > { %1432 = vmatmul.mubr.bf16.vlgmr.msra.gmra.mrb[0].mxu1 %v405_v60  ;;  %1480 = vmatpush3.bf16.msra.mxu0 %v404_v62 }
 0x16f   : > { %v1405_v0 = vpop.f32.mrb[4].mxu0  ;;  %1448 = vmatpush3.bf16.msra.mxu1 %v1666_v56  ;;  %1481 = vmatprep.subr.bf16.mxu0 %v405_v60  ;;  %v1675_v56 = vld [vmem:[%s1990_s5 + $0x88] sm:$0xff]  }
 0x170   : > { %v357_v1 = vpop.f32.mrb[5].mxu0  ;;  %1449 = vmatprep.subr.bf16.mxu1 %v1667_v63 }
 0x171   : > { %v1406_v3 = vpop.f32.mrb[6].mxu0 }
 0x172   : > { %v407_v4 = vpack.c.bf16 %v1406_v3, %v1405_v0  ;;  %v360_v5 = vpop.f32.mrb[7].mxu0  ;;  %1482 = vmatpush3.bf16.msra.mxu0 %v405_v60 }
 0x173   : > { %v406_v6 = vpack.c.bf16 %v360_v5, %v357_v1  ;;  %1450 = vmatpush3.bf16.msra.mxu1 %v1667_v63 }
 0x174   : > { %1451 = vmatprep.subr.bf16.mxu1 %v1668_v2 }
 0x175   : > { %1435 = vmatprep.mubr.bf16.mxu1 %v406_v6  ;;  %1483 = vmatprep.subr.bf16.mxu0 %v406_v6 }
 0x176   : > { %1436 = vmatmul.mubr.bf16.gmra.mrb[4].mxu1 %v407_v4  ;;  %1484 = vmatpush3.bf16.msra.mxu0 %v406_v6 }
 0x177   : > { %v1409_v8 = vpop.f32.mrb[8].mxu0  ;;  %1452 = vmatpush3.bf16.msra.mxu1 %v1668_v2  ;;  %1485 = vmatprep.subr.bf16.mxu0 %v407_v4 }
 0x178   : > { %v373_v9 = vpop.f32.mrb[9].mxu0  ;;  %1453 = vmatprep.subr.bf16.mxu1 %v1669_v7 }
 0x179   : > { %v1410_v11 = vpop.f32.mrb[10].mxu0 }
 0x17a   : > { %v409_v12 = vpack.c.bf16 %v1410_v11, %v1409_v8  ;;  %v376_v13 = vpop.f32.mrb[11].mxu0  ;;  %1486 = vmatpush3.bf16.msra.mxu0 %v407_v4 }
 0x17b   : > { %v408_v14 = vpack.c.bf16 %v376_v13, %v373_v9  ;;  %1454 = vmatpush3.bf16.msra.mxu1 %v1669_v7 }
 0x17c   : > { %1455 = vmatprep.subr.bf16.mxu1 %v1670_v10 }
 0x17d   : > { %1439 = vmatprep.mubr.bf16.mxu1 %v408_v14  ;;  %1487 = vmatprep.subr.bf16.mxu0 %v408_v14 }
 0x17e   : > { %1440 = vmatmul.mubr.bf16.gmra.mrb[8].mxu1 %v409_v12  ;;  %1488 = vmatpush3.bf16.msra.mxu0 %v408_v14 }
 0x17f   : > { %v1413_v25 = vpop.f32.mrb[12].mxu0  ;;  %1456 = vmatpush3.bf16.msra.mxu1 %v1670_v10  ;;  %1489 = vmatprep.subr.bf16.mxu0 %v409_v12 }
 0x180   : > { %v389_v29 = vpop.f32.mrb[13].mxu0  ;;  %1457 = vmatprep.subr.bf16.mxu1 %v1671_v15 }
 0x181   : > { %v1414_v34 = vpop.f32.mrb[14].mxu0 }
 0x182   : > { %v411_v37 = vpack.c.bf16 %v1414_v34, %v1413_v25  ;;  %v392_v41 = vpop.f32.mrb[15].mxu0  ;;  %1490 = vmatpush3.bf16.msra.mxu0 %v409_v12 }
 0x183   : > { %v410_v45 = vpack.c.bf16 %v392_v41, %v389_v29  ;;  %1458 = vmatpush3.bf16.msra.mxu1 %v1671_v15 }
 0x184   : > { %1459 = vmatprep.subr.bf16.mxu1 %v1672_v31 }
 0x185   : > { %1443 = vmatprep.mubr.bf16.mxu1 %v410_v45  ;;  %1491 = vmatprep.subr.bf16.mxu0 %v410_v45 }
 0x186   : > { %1444 = vmatmul.mubr.bf16.gmra.mrb[12].mxu1 %v411_v37  ;;  %1492 = vmatpush3.bf16.msra.mxu0 %v410_v45 }
 0x187   : > { %1460 = vmatpush3.bf16.msra.mxu1 %v1672_v31  ;;  %1493 = vmatprep.subr.bf16.mxu0 %v411_v37 }
 0x188   : > { %1461 = vmatprep.subr.bf16.mxu1 %v1673_v47  ;;  %1463 = vmatprep.mubr.bf16.mxu1 %v2026_v19  ;;  %v1677_v19 = vld [vmem:[%s1990_s5 + $0x98] sm:$0xff]  }
 0x18a   : > { %1494 = vmatpush3.bf16.msra.mxu0 %v411_v37 }
 0x18b   : > { %1462 = vmatpush3.bf16.msra.mxu1 %v1673_v47  ;;  %1511 = vmatprep.subr.bf16.mxu0 %v1674_v55 }
 0x18c   : > { %1543 = vmatprep.subr.bf16.mxu1 %v1674_v55 }
 0x18d   : > { %1496 = vmatmul.mubr.bf16.vlgmr.msra.gmra.mrb[16].mxu0 %v2108_v48 }
 0x18e   : > { %1464 = vmatmul.mubr.bf16.vlgmr.msra.gmra.mrb[0].mxu1 %v2032_v21  ;;  %1499 = vmatprep.mubr.bf16.mxu0 %v2110_v49  ;;  %v1678_v21 = vld [vmem:[%s1990_s5 + $0xa0] sm:$0xff]  }
 0x18f   : > { %1467 = vmatprep.mubr.bf16.mxu1 %v2043_v24  ;;  %1512 = vmatpush3.bf16.msra.mxu0 %v1674_v55  ;;  %v1679_v24 = vld [vmem:[%s1990_s5 + $0xa8] sm:$0xff]  }
 0x190   : > { %1513 = vmatprep.subr.bf16.mxu0 %v1675_v56  ;;  %1551 = vmatpush3.bf16.msra.mxu1 %v1674_v55 }
 0x191   : > { %1544 = vmatprep.subr.bf16.mxu1 %v1675_v56 }
 0x193   : > { %1514 = vmatpush3.bf16.msra.mxu0 %v1675_v56 }
 0x194   : > { %1515 = vmatprep.subr.bf16.mxu0 %v1676_v57  ;;  %1552 = vmatpush3.bf16.msra.mxu1 %v1675_v56 }
 0x195   : > { %1500 = vmatmul.mubr.bf16.gmra.mrb[20].mxu0 %v2114_v50  ;;  %1545 = vmatprep.subr.bf16.mxu1 %v1676_v57 }
 0x196   : > { %1468 = vmatmul.mubr.bf16.gmra.mrb[4].mxu1 %v2059_v30  ;;  %1503 = vmatprep.mubr.bf16.mxu0 %v2116_v51  ;;  %v1680_v30 = vld [vmem:[%s1990_s5 + $0xb0] sm:$0xff]  }
 0x197   : > { %1516 = vmatpush3.bf16.msra.mxu0 %v1676_v57  ;;  %1471 = vmatprep.mubr.bf16.mxu1 %v2071_v35  ;;  %v1681_v35 = vld [vmem:[%s1990_s5 + $0xb8] sm:$0xff]  }
 0x198   : > { %1517 = vmatprep.subr.bf16.mxu0 %v1677_v19  ;;  %1553 = vmatpush3.bf16.msra.mxu1 %v1676_v57 }
 0x199   : > { %1546 = vmatprep.subr.bf16.mxu1 %v1677_v19 }
 0x19b   : > { %1518 = vmatpush3.bf16.msra.mxu0 %v1677_v19 }
 0x19c   : > { %1519 = vmatprep.subr.bf16.mxu0 %v1678_v21  ;;  %1554 = vmatpush3.bf16.msra.mxu1 %v1677_v19 }
 0x19d   : > { %1504 = vmatmul.mubr.bf16.gmra.mrb[24].mxu0 %v2120_v52  ;;  %1547 = vmatprep.subr.bf16.mxu1 %v1678_v21 }
 0x19e   : > { %1507 = vmatprep.mubr.bf16.mxu0 %v2122_v53  ;;  %1472 = vmatmul.mubr.bf16.gmra.mrb[8].mxu1 %v2084_v40 }
 0x19f   : > { %1520 = vmatpush3.bf16.msra.mxu0 %v1678_v21  ;;  %1475 = vmatprep.mubr.bf16.mxu1 %v2095_v44 }
 0x1a0   : > { %1521 = vmatprep.subr.bf16.mxu0 %v1679_v24  ;;  %1555 = vmatpush3.bf16.msra.mxu1 %v1678_v21 }
 0x1a1   : > { %1548 = vmatprep.subr.bf16.mxu1 %v1679_v24 }
 0x1a3   : > { %1522 = vmatpush3.bf16.msra.mxu0 %v1679_v24 }
 0x1a4   : > { %1556 = vmatpush3.bf16.msra.mxu1 %v1679_v24  ;;  %1523 = vmatprep.subr.bf16.mxu0 %v1680_v30 }
 0x1a5   : > { %1508 = vmatmul.mubr.bf16.gmra.mrb[28].mxu0 %v2126_v54  ;;  %1549 = vmatprep.subr.bf16.mxu1 %v1680_v30 }
 0x1a6   : > { %1476 = vmatmul.mubr.bf16.gmra.mrb[12].mxu1 %v2102_v46 }
 0x1a7   : > { %1524 = vmatpush3.bf16.msra.mxu0 %v1680_v30 }
 0x1a8   : > { %1557 = vmatpush3.bf16.msra.mxu1 %v1680_v30  ;;  %1525 = vmatprep.subr.bf16.mxu0 %v1681_v35 }
 0x1a9   : > { %1550 = vmatprep.subr.bf16.mxu1 %v1681_v35 }
 0x1ab   : > { %1526 = vmatpush3.bf16.msra.mxu0 %v1681_v35 }
 0x1ac   : > { %1558 = vmatpush3.bf16.msra.mxu1 %v1681_v35 }
 0x260   : > { %v1497_v40 = vpop.f32.mrb[16].mxu0 }
 0x261   : > { %v818_v44 = vmul.f32 2.0, %v1497_v40  ;;  %v2162_v48 = vpop.f32.mrb[0].mxu1  ;;  %v753_v49 = vpop.f32.mrb[17].mxu0 }
 0x262   : > { %v816_v50 = vmul.f32 2.0, %v753_v49  ;;  %v2164_v51 = vpop.f32.mrb[1].mxu1  ;;  %v1498_v52 = vpop.f32.mrb[18].mxu0 }
 0x263   : > { %v819_v46 = vmul.f32 2.0, %v1498_v52  ;;  %v2166_v53 = vpop.f32.mrb[2].mxu1  ;;  %v756_v54 = vpop.f32.mrb[19].mxu0  ;;  %v834_v60 = vsub.f32 %v818_v44, %v2022_v18 }
 0x264   : > { %v817_v58 = vmul.f32 2.0, %v756_v54  ;;  %v2168_v59 = vpop.f32.mrb[3].mxu1  ;;  %v832_v62 = vsub.f32 %v816_v50, %v2018_v16 }
 0x265   : > { %v835_v61 = vsub.f32 %v819_v46, %v2028_v20  ;;  %v1295_v46 = vld [vmem:[%s206_s27] ss:$0 sm:$0xff] }
 0x266   : > { %v833_v63 = vsub.f32 %v817_v58, %v2020_v17 }
 0x267   : > { %v849_v0 = vpack.c.bf16 %v835_v61, %v834_v60 }
 0x268   : > { %v1501_v1 = vpop.f32.mrb[20].mxu0  ;;  %v848_v2 = vpack.c.bf16 %v833_v63, %v832_v62 }
 0x269   : > { %v822_v3 = vmul.f32 2.0, %v1501_v1  ;;  %v2174_v4 = vpop.f32.mrb[4].mxu1  ;;  %v769_v5 = vpop.f32.mrb[21].mxu0 }
 0x26a   : > { %v820_v6 = vmul.f32 2.0, %v769_v5  ;;  %v2176_v7 = vpop.f32.mrb[5].mxu1  ;;  %v1502_v8 = vpop.f32.mrb[22].mxu0  ;;  %1527 = vmatprep.mubr.bf16.mxu0 %v848_v2 }
 0x26b   : > { %v823_v9 = vmul.f32 2.0, %v1502_v8  ;;  %v2178_v18 = vpop.f32.mrb[6].mxu1  ;;  %v772_v20 = vpop.f32.mrb[23].mxu0  ;;  %1528 = vmatmul.mubr.bf16.vlgmr.msra.gmra.mrb[32].mxu0 %v849_v0  ;;  %v838_v17 = vsub.f32 %v822_v3, %v2047_v26 }
 0x26c   : > { %v821_v16 = vmul.f32 2.0, %v772_v20  ;;  %v2180_v10 = vpop.f32.mrb[7].mxu1  ;;  %v836_v12 = vsub.f32 %v820_v6, %v2034_v22 }
 0x26d   : > { %v839_v11 = vsub.f32 %v823_v9, %v2049_v27 }
 0x26e   : > { %v837_v13 = vsub.f32 %v821_v16, %v2036_v23 }
 0x26f   : > { %v851_v14 = vpack.c.bf16 %v839_v11, %v838_v17 }
 0x270   : > { %v1505_v15 = vpop.f32.mrb[24].mxu0  ;;  %v850_v25 = vpack.c.bf16 %v837_v13, %v836_v12 }
 0x271   : > { %v826_v29 = vmul.f32 2.0, %v1505_v15  ;;  %v785_v31 = vpop.f32.mrb[25].mxu0 }
 0x272   : > { %v824_v34 = vmul.f32 2.0, %v785_v31  ;;  %v1506_v37 = vpop.f32.mrb[26].mxu0  ;;  %1531 = vmatprep.mubr.bf16.mxu0 %v850_v25 }
 0x273   : > { %v827_v41 = vmul.f32 2.0, %v1506_v37  ;;  %v788_v45 = vpop.f32.mrb[27].mxu0  ;;  %1532 = vmatmul.mubr.bf16.gmra.mrb[36].mxu0 %v851_v14  ;;  %v842_v26 = vsub.f32 %v826_v29, %v2065_v33 }
 0x274   : > { %v825_v47 = vmul.f32 2.0, %v788_v45  ;;  %v840_v22 = vsub.f32 %v824_v34, %v2053_v28 }
 0x275   : > { %v843_v27 = vsub.f32 %v827_v41, %v2073_v36 }
 0x276   : > { %v841_v23 = vsub.f32 %v825_v47, %v2062_v32 }
 0x277   : > { %v853_v55 = vpack.c.bf16 %v843_v27, %v842_v26 }
 0x278   : > { %v1509_v56 = vpop.f32.mrb[28].mxu0  ;;  %v852_v57 = vpack.c.bf16 %v841_v23, %v840_v22 }
 0x279   : > { %v830_v19 = vmul.f32 2.0, %v1509_v56  ;;  %v801_v21 = vpop.f32.mrb[29].mxu0 }
 0x27a   : > { %v828_v24 = vmul.f32 2.0, %v801_v21  ;;  %v1510_v30 = vpop.f32.mrb[30].mxu0  ;;  %1535 = vmatprep.mubr.bf16.mxu1 %v852_v57 }
 0x27b   : > { %v831_v35 = vmul.f32 2.0, %v1510_v30  ;;  %v804_v40 = vpop.f32.mrb[31].mxu0  ;;  %1536 = vmatmul.mubr.bf16.vlgmr.msra.gmra.mrb[8].mxu1 %v853_v55  ;;  %v846_v33 = vsub.f32 %v830_v19, %v2088_v42 }
 0x27c   : > { %v829_v44 = vmul.f32 2.0, %v804_v40  ;;  %v844_v28 = vsub.f32 %v828_v24, %v2077_v38 }
 0x27d   : > { %v847_v36 = vsub.f32 %v831_v35, %v2090_v43 }
 0x27e   : > { %v845_v32 = vsub.f32 %v829_v44, %v2079_v39 }
 0x27f   : > { %v855_v49 = vpack.c.bf16 %v847_v36, %v846_v33 }
 0x280   : > { %v854_v50 = vpack.c.bf16 %v845_v32, %v844_v28 }
 0x282   : > { %1539 = vmatprep.mubr.bf16.mxu1 %v854_v50 }
 0x283   : > { %1540 = vmatmul.mubr.bf16.gmra.mrb[12].mxu1 %v855_v49 }
 0x33e   : > { %v1529_v52 = vpop.f32.mrb[32].mxu0 }
 0x33f   : > { %v1559_v54 = vadd.f32 %v1529_v52, %v2162_v48  ;;  %v955_v58 = vpop.f32.mrb[33].mxu0 }
 0x340   : > { %v1560_v42 = vadd.f32 %v955_v58, %v2164_v51  ;;  %v1530_v43 = vpop.f32.mrb[34].mxu0 }
 0x341   : > { %v2201_v60 = vadd.f32 %v1559_v54, %v1295_v46  ;;  %v1561_v38 = vadd.f32 %v1530_v43, %v2166_v53  ;;  %v958_v39 = vpop.f32.mrb[35].mxu0 }
 0x342   : > { %v2204_v61 = vadd.f32 %v1560_v42, %v1295_v46  ;;  %v1562_v62 = vadd.f32 %v958_v39, %v2168_v59 }
 0x343   : > { %v2207_v63 = vadd.f32 %v1561_v38, %v1295_v46  ;;  %vm1063_vm2 = vcmp.ge.f32.partialorder (!%p1296_p11), %v2201_v60, 0.0  ;;  %v1079_v47 = vmul.f32 (!%p1296_p11), 0.01, %v2201_v60 }
 0x344   : > { %v2209_v0 = vadd.f32 %v1562_v62, %v1295_v46  ;;  %vm1061_vm0 = vcmp.ge.f32.partialorder (!%p1296_p11), %v2204_v61, 0.0  ;;  %v1077_v41 = vmul.f32 (!%p1296_p11), 0.01, %v2204_v61 }
 0x345   : > { %vm1064_vm3 = vcmp.ge.f32.partialorder (!%p1296_p11), %v2207_v63, 0.0  ;;  %v1080_v26 = vmul.f32 (!%p1296_p11), 0.01, %v2207_v63  ;;  %v1095_v55 = vsel (!%p1296_p11), %vm1063_vm2, %v2201_v60, %v1079_v47 }
 0x346   : > { %v1533_v1 = vpop.f32.mrb[36].mxu0  ;;  %vm1062_vm1 = vcmp.ge.f32.partialorder (!%p1296_p11), %v2209_v0, 0.0  ;;  %v1078_v45 = vmul.f32 (!%p1296_p11), 0.01, %v2209_v0  ;;  %v1093_v27 = vsel (!%p1296_p11), %vm1061_vm0, %v2204_v61, %v1077_v41  ;;  %1111 = vst [vmem:[#allocation9 + $0x10] sm:$0xff] (!%p1296_p11), %v1095_v55 }
 0x347   : > { %v1563_v48 = vadd.f32 %v1533_v1, %v2174_v4  ;;  %v971_v2 = vpop.f32.mrb[37].mxu0  ;;  %1109 = vst [vmem:[#allocation9] sm:$0xff] (!%p1296_p11), %v1093_v27  ;;  %v1096_v56 = vsel (!%p1296_p11), %vm1064_vm3, %v2207_v63, %v1080_v26 }
 0x348   : > { %v1564_v51 = vadd.f32 %v971_v2, %v2176_v7  ;;  %v1534_v3 = vpop.f32.mrb[38].mxu0  ;;  %v1094_v22 = vsel (!%p1296_p11), %vm1062_vm1, %v2209_v0, %v1078_v45  ;;  %1112 = vst [vmem:[#allocation9 + $0x18] sm:$0xff] (!%p1296_p11), %v1096_v56 }
 0x349   : > { %v2213_v5 = vadd.f32 %v1563_v48, %v1295_v46  ;;  %v1565_v53 = vadd.f32 %v1534_v3, %v2178_v18  ;;  %v974_v6 = vpop.f32.mrb[39].mxu0  ;;  %1110 = vst [vmem:[#allocation9 + $0x8] sm:$0xff] (!%p1296_p11), %v1094_v22 }
 0x34a   : > { %v2216_v8 = vadd.f32 %v1564_v51, %v1295_v46  ;;  %v1566_v59 = vadd.f32 %v974_v6, %v2180_v10 }
 0x34b   : > { %v2219_v9 = vadd.f32 %v1565_v53, %v1295_v46  ;;  %vm1067_vm6 = vcmp.ge.f32.partialorder (!%p1296_p11), %v2213_v5, 0.0  ;;  %v1083_v21 = vmul.f32 (!%p1296_p11), 0.01, %v2213_v5 }
 0x34c   : > { %v2221_v20 = vadd.f32 %v1566_v59, %v1295_v46  ;;  %vm1065_vm4 = vcmp.ge.f32.partialorder (!%p1296_p11), %v2216_v8, 0.0  ;;  %v1081_v23 = vmul.f32 (!%p1296_p11), 0.01, %v2216_v8 }
 0x34d   : > { %vm1068_vm7 = vcmp.ge.f32.partialorder (!%p1296_p11), %v2219_v9, 0.0  ;;  %v1084_v30 = vmul.f32 (!%p1296_p11), 0.01, %v2219_v9  ;;  %v1099_v40 = vsel (!%p1296_p11), %vm1067_vm6, %v2213_v5, %v1083_v21 }
 0x34e   : > { %v1537_v16 = vpop.f32.mrb[8].mxu1  ;;  %vm1066_vm5 = vcmp.ge.f32.partialorder (!%p1296_p11), %v2221_v20, 0.0  ;;  %v1082_v57 = vmul.f32 (!%p1296_p11), 0.01, %v2221_v20  ;;  %v1097_v19 = vsel (!%p1296_p11), %vm1065_vm4, %v2216_v8, %v1081_v23  ;;  %1115 = vst [vmem:[#allocation9 + $0x30] sm:$0xff] (!%p1296_p11), %v1099_v40 }
 0x34f   : > { %v2223_v17 = vadd.f32 %v1537_v16, %v1295_v46  ;;  %v987_v4 = vpop.f32.mrb[9].mxu1  ;;  %1113 = vst [vmem:[#allocation9 + $0x20] sm:$0xff] (!%p1296_p11), %v1097_v19  ;;  %v1100_v33 = vsel (!%p1296_p11), %vm1068_vm7, %v2219_v9, %v1084_v30 }
 0x350   : > { %v2225_v11 = vadd.f32 %v1295_v46, %v987_v4  ;;  %v1538_v7 = vpop.f32.mrb[10].mxu1  ;;  %v1098_v24 = vsel (!%p1296_p11), %vm1066_vm5, %v2221_v20, %v1082_v57  ;;  %1116 = vst [vmem:[#allocation9 + $0x38] sm:$0xff] (!%p1296_p11), %v1100_v33 }
 0x351   : > { %v2227_v12 = vadd.f32 %v1538_v7, %v1295_v46  ;;  %v990_v13 = vpop.f32.mrb[11].mxu1  ;;  %1114 = vst [vmem:[#allocation9 + $0x28] sm:$0xff] (!%p1296_p11), %v1098_v24  ;;  %vm1071_vm10 = vcmp.ge.f32.partialorder (!%p1296_p11), %v2223_v17, 0.0  ;;  %v1087_v28 = vmul.f32 (!%p1296_p11), 0.01, %v2223_v17 }
 0x352   : > { %v2229_v18 = vadd.f32 %v1295_v46, %v990_v13  ;;  %vm1069_vm8 = vcmp.ge.f32.partialorder (!%p1296_p11), %v2225_v11, 0.0  ;;  %v1085_v35 = vmul.f32 (!%p1296_p11), 0.01, %v2225_v11 }
 0x353   : > { %vm1072_vm11 = vcmp.ge.f32.partialorder (!%p1296_p11), %v2227_v12, 0.0  ;;  %v1088_v49 = vmul.f32 (!%p1296_p11), 0.01, %v2227_v12  ;;  %v1103_v52 = vsel (!%p1296_p11), %vm1071_vm10, %v2223_v17, %v1087_v28 }
 0x354   : > { %1060 = sbr.rel (%p1296_p11) target bundleno = 864 (0x360), region = 52  ;;  %vm1070_vm9 = vcmp.ge.f32.partialorder (!%p1296_p11), %v2229_v18, 0.0  ;;  %v1086_v44 = vmul.f32 (!%p1296_p11), 0.01, %v2229_v18  ;;  %v1101_v36 = vsel (!%p1296_p11), %vm1069_vm8, %v2225_v11, %v1085_v35  ;;  %1119 = vst [vmem:[#allocation9 + $0x50] sm:$0xff] (!%p1296_p11), %v1103_v52 }
 0x355   : > { %1117 = vst [vmem:[#allocation9 + $0x40] sm:$0xff] (!%p1296_p11), %v1101_v36  ;;  %v1104_v54 = vsel (!%p1296_p11), %vm1072_vm11, %v2227_v12, %v1088_v49 }
 0x356   : > { %v1541_v14 = vpop.f32.mrb[12].mxu1  ;;  %v1102_v32 = vsel (!%p1296_p11), %vm1070_vm9, %v2229_v18, %v1086_v44  ;;  %1120 = vst [vmem:[#allocation9 + $0x58] sm:$0xff] (!%p1296_p11), %v1104_v54 }
 0x357   : > { %v2231_v15 = vadd.f32 %v1541_v14, %v1295_v46  ;;  %v1003_v10 = vpop.f32.mrb[13].mxu1  ;;  %1118 = vst [vmem:[#allocation9 + $0x48] sm:$0xff] (!%p1296_p11), %v1102_v32 }
 0x358   : > { %v2233_v25 = vadd.f32 %v1295_v46, %v1003_v10  ;;  %v1542_v29 = vpop.f32.mrb[14].mxu1 }
 0x359   : > { %v2235_v31 = vadd.f32 %v1542_v29, %v1295_v46  ;;  %v1006_v34 = vpop.f32.mrb[15].mxu1  ;;  %vm1075_vm14 = vcmp.ge.f32.partialorder (!%p1296_p11), %v2231_v15, 0.0  ;;  %v1091_v42 = vmul.f32 (!%p1296_p11), 0.01, %v2231_v15 }
 0x35a   : > { %v2237_v37 = vadd.f32 %v1295_v46, %v1006_v34  ;;  %vm1073_vm12 = vcmp.ge.f32.partialorder (!%p1296_p11), %v2233_v25, 0.0  ;;  %v1089_v50 = vmul.f32 (!%p1296_p11), 0.01, %v2233_v25 }
 0x35b   : > { %vm1076_vm15 = vcmp.ge.f32.partialorder %v2235_v31, 0.0  ;;  %v1092_v38 = vmul.f32 0.01, %v2235_v31  ;;  %v1107_v39 = vsel %vm1075_vm14, %v2231_v15, %v1091_v42 }
 0x35c   : > { %vm1074_vm13 = vcmp.ge.f32.partialorder %v2237_v37, 0.0  ;;  %v1090_v46 = vmul.f32 0.01, %v2237_v37  ;;  %v1105_v58 = vsel %vm1073_vm12, %v2233_v25, %v1089_v50  ;;  %1123 = vst [vmem:[#allocation9 + $0x70] sm:$0xff] %v1107_v39 }
 0x35d   : > { %1121 = vst [vmem:[#allocation9 + $0x60] sm:$0xff] %v1105_v58  ;;  %v1108_v62 = vsel %vm1076_vm15, %v2235_v31, %v1092_v38 }
 0x35e   : > { %v1106_v43 = vsel %vm1074_vm13, %v2237_v37, %v1090_v46  ;;  %1124 = vst [vmem:[#allocation9 + $0x78] sm:$0xff] %v1108_v62 }
 0x35f   : > { %1122 = vst [vmem:[#allocation9 + $0x68] sm:$0xff] %v1106_v43 }
 0x360 PF: > { %p1297_p13 = scmp.ne.s32.totalorder %s1888_s19, 2 }
 0x361   : > { %1129 = vst [vmem:[#allocation9] sm:$0xff] (!%p1297_p13), %v2204_v61  ;;  %1130 = vst [vmem:[#allocation9 + $0x8] sm:$0xff] (!%p1297_p13), %v2209_v0 }
 0x362   : > { %1128 = sbr.rel (%p1297_p13) target bundleno = 873 (0x369), region = 56  ;;  %1131 = vst [vmem:[#allocation9 + $0x10] sm:$0xff] (!%p1297_p13), %v2201_v60  ;;  %1132 = vst [vmem:[#allocation9 + $0x18] sm:$0xff] (!%p1297_p13), %v2207_v63 }
 0x363   : > { %1133 = vst [vmem:[#allocation9 + $0x20] sm:$0xff] (!%p1297_p13), %v2216_v8  ;;  %1134 = vst [vmem:[#allocation9 + $0x28] sm:$0xff] (!%p1297_p13), %v2221_v20 }
 0x364   : > { %1135 = vst [vmem:[#allocation9 + $0x30] sm:$0xff] (!%p1297_p13), %v2213_v5  ;;  %1136 = vst [vmem:[#allocation9 + $0x38] sm:$0xff] (!%p1297_p13), %v2219_v9 }
 0x365   : > { %1137 = vst [vmem:[#allocation9 + $0x40] sm:$0xff] (!%p1297_p13), %v2225_v11  ;;  %1138 = vst [vmem:[#allocation9 + $0x48] sm:$0xff] (!%p1297_p13), %v2229_v18 }
 0x366   : > { %1139 = vst [vmem:[#allocation9 + $0x50] sm:$0xff] (!%p1297_p13), %v2223_v17  ;;  %1140 = vst [vmem:[#allocation9 + $0x58] sm:$0xff] (!%p1297_p13), %v2227_v12 }
 0x367   : > { %1141 = vst [vmem:[#allocation9 + $0x60] sm:$0xff] (!%p1297_p13), %v2233_v25  ;;  %1142 = vst [vmem:[#allocation9 + $0x68] sm:$0xff] (!%p1297_p13), %v2237_v37 }
 0x368   : > { %1143 = vst [vmem:[#allocation9 + $0x70] sm:$0xff] (!%p1297_p13), %v2231_v15  ;;  %1144 = vst [vmem:[#allocation9 + $0x78] sm:$0xff] (!%p1297_p13), %v2235_v31 }
 0x369 PF: > { %p1615_p3 = scmp.eq.s32.totalorder %s1888_s19, 2  ;;  %s1841_s24 = smov [#allocation9]  }
 0x36a   : > { %s1151_s26 = sshll.u32 %s1841_s24, 4  ;;  %s1152_s26 = int_to_ptr.vmem [resolvable:$true] %s1151_s26 }
 0x36b   : > { %s1762_s5 = scalar_lea.vmem %s1152_s26, 2048  ;;  %p1769_p10 = scmp.lt.s32.totalorder %s1152_s26, %s1152_s26 }
 0x36c   : > { %p1763_p7 = scmp.ne.s32.totalorder %s1152_s26, %s1762_s5  ;;  %p1770_p1 = scmp.lt.s32.totalorder %s1762_s5, %s1762_s5 }
 0x36e   : > { %p1764_p6 = pnand %p1763_p7, %p1615_p3  ;;  %p1771_p4 = por %p1770_p1, %p1769_p10 }
 0x370   : > { %p1765_p9 = pneg %p1764_p6 }
 0x372   : > { %p1772_p5 = pnand %p1771_p4, %p1765_p9 }
 0x374   : > { %1775 = shalt.err (!%p1772_p5)
}
 0x375   : > { %s1776_s23 = scalar_lea.hbm %s2345_s4, 2048 }
 0x376   : > { %p1777_p8 = scmp.ne.s32.totalorder %s2345_s4, %s1776_s23  ;;  %p1782_p2 = scmp.lt.u32.totalorder %s1776_s23, %s2345_s4 }
 0x378   : > { %p1778_p12 = pnand %p1777_p8, %p1615_p3 }
 0x37a   : > { %p1779_p0 = pneg %p1778_p12 }
 0x37c   : > { %p1784_p11 = pnand %p1782_p2, %p1779_p0 }
 0x37e   : > { %1787 = shalt.err (!%p1784_p11)
}
 0x37f   : > { %s1842_s8 = smov 128   ;;  %s1843_s20 = smov 8  }
 0x380   : > { %1601 = dma.vmem_to_hbm [thread:$0]  (%p1615_p3), %s1152_s26, 2048, %s2345_s4, [#allocation6], %s1842_s8, %s1842_s8, %s1843_s20  }
 0x381   : > { %1815 = dma.done.wait (%p1615_p3), [#allocation6], 2048  }
 0x382   : > { %1817 = vsyncadd (%p1615_p3), [#allocation6], 4294965248 }
 0x383 PF: > { %p16_p13 = scmp.ge.s32.totalorder %s1914_s25, 5   ;;  %s2358_s15 = smov %s1824_s16 }
 0x384   : > { %s2359_s16 = smov %s1828_s17  ;;  %s2360_s17 = smov %s1940_s14 }
 0x385   : > { %s2361_s18 = smov %s1914_s25  ;;  %18 = sbr.rel (!%p16_p13) target bundleno = 5 (0x5), region = 95 }
 0x38c   :  { %1167 = vsyncpa [#allocation5], 1 }
 0x38d   :  { %1169 = vsyncpa [#allocation5 + $0x1], 1 }
 0x38e   :  { %1170 = vsyncpa [#allocation8], 1 }
 0x38f   :  { %1172 = vsyncpa [#allocation8 + $0x1], 1 }
 0x390   :  { %1173 = vsyncpa [#allocation6], 1 }
 0x391   :  { %1175 = vsyncpa [#allocation6 + $0x1], 1 }
 0x392   :  { %1176 = vsyncmov [#allocation3] }
 0x395   :  { %s1177_s19 = vpop.sfrf %1176 }
 0x396   :  { %p1302_p3 = scmp.ne.s32.totalorder %s1177_s19, 0 }
 0x398   :  { %1181 = shalt.err (%p1302_p3)  }

</bundles_post_ra>
